<compile_context>
chip_gen: v6e
topology: v6e:2x2x1
jax: 0.10.0
libtpu: 0.0.40
codegen_flags: <defaults>
</compile_context>

<pallas_src>
import functools
import math
from typing import NamedTuple

import jax
import jax.numpy as jnp
from jax.experimental import pallas as pl
from jax.experimental.pallas import tpu as pltpu


def _round_up(x: int, m: int) -> int:
    return ((x + m - 1) // m) * m


class PhasedLSTMParams(NamedTuple):
    w_cat: jax.Array      # (P + H, 4H)
    bias: jax.Array       # (1, 4H)
    timegate: jax.Array   # (5, H)
    input_size: int
    hidden_size: int
    padded_in: int        # P


def pack_params(w_ih_t, w_hh_t, bias, period, phase, ratio_on):
    """One-time host-side packing: fuse weights, pad x width, precompute reciprocals."""
    I, four_h = w_ih_t.shape
    H = w_hh_t.shape[0]
    assert four_h == 4 * H
    P = _round_up(I + 1, 128)                       # x cols + 1 time col, padded to lanes
    w_cat = jnp.zeros((P + H, four_h), jnp.float32)
    w_cat = w_cat.at[:I].set(w_ih_t.astype(jnp.float32))      # x rows
    w_cat = w_cat.at[P:].set(w_hh_t.astype(jnp.float32))      # h rows (time/pad rows = 0)
    bias2d = bias.reshape(1, four_h).astype(jnp.float32)
    timegate = jnp.stack(
        [phase, period, 1.0 / period, ratio_on, 1.0 / ratio_on], axis=0
    ).astype(jnp.float32)                                      # (5, H)
    return PhasedLSTMParams(w_cat, bias2d, timegate, I, H, P)


def _phased_lstm_seq_kernel(xa_ref, h0_ref, c0_ref, w_ref, b_ref, tg_ref,
                            out_ref, h_scr, c_scr,
                            *, input_size: int, hidden_size: int,
                            padded_in: int, leak: float):
    I, H = input_size, hidden_size
    t = pl.program_id(1)

    # Load the initial state into the VMEM scratch accumulators once per batch block.
    @pl.when(t == 0)
    def _():
        h_scr[...] = h0_ref[...]
        c_scr[...] = c0_ref[...]

    xa = xa_ref[0]                     # (Bb, P): [x_t | time_t | zero pad]
    h_prev = h_scr[...]
    c_prev = c_scr[...]

    # Single fused MXU matmul: [x_t | t | pad | h_prev] @ [W_ih^T ; 0 ; W_hh^T].
    # The concat offset (P) is a multiple of 128 lanes, so this is a trivial relayout.
    xh = jnp.concatenate([xa, h_prev], axis=-1)                # (Bb, P + H)
    chunks = jnp.dot(xh, w_ref[...],
                     preferred_element_type=jnp.float32,
                     precision=jax.lax.Precision.HIGHEST) + b_ref[...]   # (Bb, 4H)

    # One EUP sigmoid pass over the full 4H-lane block, then slice the gates.
    s_all = jax.nn.sigmoid(chunks)
    input_gate = s_all[:, 0 * H:1 * H]
    forget_gate = s_all[:, 1 * H:2 * H]
    output_gate = s_all[:, 2 * H:3 * H]
    c_cand = jnp.tanh(chunks[:, 3 * H:4 * H])

    new_c = forget_gate * c_prev + input_gate * c_cand
    new_h = output_gate * jnp.tanh(new_c)

    # ---- time (phase) gate ----
    tt = xa[:, I:I + 1]                # (Bb, 1) timestamp column folded into x block
    phase = tg_ref[0:1, :]
    period = tg_ref[1:2, :]
    inv_period = tg_ref[2:3, :]
    ratio_on = tg_ref[3:4, :]
    inv_ratio_on = tg_ref[4:5, :]

    shifted = tt - phase                                        # (Bb, H)
    # torch.fmod semantics: x - trunc(x/y)*y (sign follows dividend); divisions are
    # replaced by host-precomputed reciprocals.  When tt < phase, cycle_ratio is
    # slightly negative and k = leak*cycle_ratio follows it — identical to PyTorch.
    fmod = shifted - jnp.trunc(shifted * inv_period) * period
    cycle_ratio = fmod * inv_period
    k_up = 2.0 * cycle_ratio * inv_ratio_on
    k_down = 2.0 - k_up
    k_closed = leak * cycle_ratio
    k = jnp.where(cycle_ratio < ratio_on, k_down, k_closed)
    k = jnp.where(cycle_ratio < 0.5 * ratio_on, k_up, k)

    gated_c = k * new_c + (1.0 - k) * c_prev
    gated_h = k * new_h + (1.0 - k) * h_prev

    # Carry the state in VMEM (never leaves the chip between steps).
    h_scr[...] = gated_h
    c_scr[...] = gated_c

    # Combined [h | c] output slab: single per-step writeback stream.
    # (For H < 128 these stores are still lane-masked; packing several cells/layers
    # along the last dim would make them fully lane-dense.)
    out_ref[0, :, 0:H] = gated_h
    out_ref[0, :, H:2 * H] = gated_c


def phased_lstm_sequence(xs, times, h0, c0, params: PhasedLSTMParams,
                         *, leak: float = 0.001, batch_block: int | None = None):
    """Runs the PhasedLSTM cell over a whole sequence inside one pallas_call.

    xs: (T, B, I), times: (T, B), h0/c0: (B, H).  Returns (hs, cs) of shape (T, B, H).
    """
    T, B, I = xs.shape
    H, P = params.hidden_size, params.padded_in
    assert I == params.input_size

    b_blk = B if batch_block is None else batch_block
    assert B % b_blk == 0 and (b_blk == B or b_blk % 8 == 0), "bad batch_block"

    # Fold the timestamp into the (padded) x block: cols [0:I)=x, col I=time, rest 0.
    xaug = jnp.zeros((T, B, P), jnp.float32)
    xaug = xaug.at[:, :, :I].set(xs.astype(jnp.float32))
    xaug = xaug.at[:, :, I].set(times.astype(jnp.float32))

    kernel = functools.partial(
        _phased_lstm_seq_kernel,
        input_size=I, hidden_size=H, padded_in=P, leak=float(leak))

    # VMEM footprint at demo shapes is a few hundred KiB — far under the 32 MiB
    # scoped default (and v7x's 64 MiB physical).  For large H/B, shrink b_blk and/or
    # cast weights to bf16 before raising vmem_limit_bytes.
    out = pl.pallas_call(
        kernel,
        out_shape=jax.ShapeDtypeStruct((T, B, 2 * H), jnp.float32),
        grid=(B // b_blk, T),                       # time (carry) axis last
        in_specs=[
            pl.BlockSpec((1, b_blk, P), lambda bi, t: (t, bi, 0)),       # x_t (+time)
            pl.BlockSpec((b_blk, H), lambda bi, t: (bi, 0)),             # h0 (resident)
            pl.BlockSpec((b_blk, H), lambda bi, t: (bi, 0)),             # c0 (resident)
            pl.BlockSpec((P + H, 4 * H), lambda bi, t: (0, 0)),          # fused weights
            pl.BlockSpec((1, 4 * H), lambda bi, t: (0, 0)),              # bias
            pl.BlockSpec((5, H), lambda bi, t: (0, 0)),                  # time-gate params
        ],
        out_specs=pl.BlockSpec((1, b_blk, 2 * H), lambda bi, t: (t, bi, 0)),
        scratch_shapes=[pltpu.VMEM((b_blk, H), jnp.float32),             # h carry
                        pltpu.VMEM((b_blk, H), jnp.float32)],            # c carry
        compiler_params=pltpu.CompilerParams(
            # batch blocks shard across v7x's 2 TensorCores; time stays sequential.
            dimension_semantics=("parallel", "arbitrary")),
    )(xaug, h0.astype(jnp.float32), c0.astype(jnp.float32),
      params.w_cat, params.bias, params.timegate)

    return out[:, :, :H], out[:, :, H:]


def phased_lstm_cell(x, time, h_prev, c_prev, params: PhasedLSTMParams,
                     *, leak: float = 0.001):
    """Single step — same semantics as PhasedLSTMCell.forward.

    Returns (new_h, (new_h, new_c))."""
    hs, cs = phased_lstm_sequence(x[None], time.reshape(1, -1), h_prev, c_prev,
                                  params, leak=leak)
    new_h, new_c = hs[0], cs[0]
    return new_h, (new_h, new_c)


# ----------------------------- pure-JAX reference -----------------------------

def _reference_step(x, time, h_prev, c_prev, w_ih_t, w_hh_t, bias, period, phase,
                    ratio_on, leak):
    H = h_prev.shape[-1]
    hi = jax.lax.Precision.HIGHEST
    chunks = (jnp.dot(x, w_ih_t, precision=hi)
              + jnp.dot(h_prev, w_hh_t, precision=hi) + bias[None, :])
    i_g = jax.nn.sigmoid(chunks[:, 0:H])
    f_g = jax.nn.sigmoid(chunks[:, H:2 * H])
    o_g = jax.nn.sigmoid(chunks[:, 2 * H:3 * H])
    c_cand = jnp.tanh(chunks[:, 3 * H:])
    new_c = f_g * c_prev + i_g * c_cand
    new_h = o_g * jnp.tanh(new_c)
    tt = time.reshape(-1, 1)
    shifted = tt - phase[None, :]
    fmod = shifted - jnp.trunc(shifted / period[None, :]) * period[None, :]
    cr = fmod / period[None, :]
    k_up = 2.0 * cr / ratio_on[None, :]
    k_down = 2.0 - k_up
    k_closed = leak * cr
    k = jnp.where(cr < ratio_on[None, :], k_down, k_closed)
    k = jnp.where(cr < 0.5 * ratio_on[None, :], k_up, k)
    return k * new_h + (1 - k) * h_prev, k * new_c + (1 - k) * c_prev


if __name__ == "__main__":
    B, INPUT, HIDDEN, T = 8, 16, 32, 12
    LEAK = 0.001
    RATIO_ON = 0.2
    PERIOD_MIN, PERIOD_MAX = 1.0, 3.0

    key = jax.random.PRNGKey(0)
    keys = jax.random.split(key, 12)

    # Deterministic synthetic parameters (shapes as in __init__; weights stored transposed).
    wb = 1.0 / math.sqrt(INPUT)
    w_ih_t = jax.random.uniform(keys[0], (INPUT, 4 * HIDDEN), jnp.float32, -wb, wb)
    hb = 1.0 / math.sqrt(HIDDEN)
    w_hh_t = jax.random.uniform(keys[1], (HIDDEN, 4 * HIDDEN), jnp.float32, -hb, hb)
    bound = 1.0 / math.sqrt(4 * HIDDEN)
    bias = jax.random.uniform(keys[2], (4 * HIDDEN,), jnp.float32, -bound, bound)
    period = jnp.exp(jax.random.uniform(keys[3], (HIDDEN,), jnp.float32,
                                        PERIOD_MIN, PERIOD_MAX))
    phase = jax.random.uniform(keys[4], (HIDDEN,), jnp.float32) * period
    ratio_on = jnp.full((HIDDEN,), RATIO_ON, jnp.float32)

    params = pack_params(w_ih_t, w_hh_t, bias, period, phase, ratio_on)

    # Inputs / state.
    xs = jax.random.normal(keys[5], (T, B, INPUT), jnp.float32)
    times = jax.random.uniform(keys[6], (T, B), jnp.float32, 0.0, 10.0)
    h0 = jax.random.normal(keys[7], (B, HIDDEN), jnp.float32)
    c0 = jax.random.normal(keys[8], (B, HIDDEN), jnp.float32)

    # --- single step (module forward semantics) ---
    new_h, (new_h2, new_c) = phased_lstm_cell(xs[0], times[0], h0, c0, params, leak=LEAK)
    jax.block_until_ready((new_h, new_c))
    ref_h, ref_c = _reference_step(xs[0], times[0], h0, c0, w_ih_t, w_hh_t, bias,
                                   period, phase, ratio_on, LEAK)
    assert jnp.allclose(new_h, ref_h, atol=1e-4, rtol=1e-4), \
        float(jnp.max(jnp.abs(new_h - ref_h)))
    assert jnp.allclose(new_c, ref_c, atol=1e-4, rtol=1e-4), \
        float(jnp.max(jnp.abs(new_c - ref_c)))

    # --- fused full sequence (recurrence inside one pallas_call) ---
    hs, cs = phased_lstm_sequence(xs, times, h0, c0, params, leak=LEAK)
    jax.block_until_ready((hs, cs))

    def scan_step(carry, xt):
        h, c = carry
        x_t, t_t = xt
        nh, nc = _reference_step(x_t, t_t, h, c, w_ih_t, w_hh_t, bias,
                                 period, phase, ratio_on, LEAK)
        return (nh, nc), (nh, nc)

    _, (ref_hs, ref_cs) = jax.lax.scan(scan_step, (h0, c0), (xs, times))
    assert jnp.allclose(hs, ref_hs, atol=1e-4, rtol=1e-4), \
        float(jnp.max(jnp.abs(hs - ref_hs)))
    assert jnp.allclose(cs, ref_cs, atol=1e-4, rtol=1e-4), \
        float(jnp.max(jnp.abs(cs - ref_cs)))

    print("KERNEL_OK")
</pallas_src>

<mosaic_0001>
module attributes {stable_mosaic.version = 11 : i64} {
  func.func @_phased_lstm_seq_kernel(%arg0: i32, %arg1: i32, %arg2: memref<1x8x128xf32, #tpu.memory_space<vmem>>, %arg3: memref<8x32xf32, #tpu.memory_space<vmem>>, %arg4: memref<8x32xf32, #tpu.memory_space<vmem>>, %arg5: memref<160x128xf32, #tpu.memory_space<vmem>>, %arg6: memref<1x128xf32, #tpu.memory_space<vmem>>, %arg7: memref<5x32xf32, #tpu.memory_space<vmem>>, %arg8: memref<1x8x64xf32, #tpu.memory_space<vmem>>, %arg9: memref<8x32xf32, #tpu.memory_space<vmem>>, %arg10: memref<8x32xf32, #tpu.memory_space<vmem>>) attributes {dimension_semantics = [#tpu.dimension_semantics<parallel>, #tpu.dimension_semantics<arbitrary>], iteration_bounds = array<i64: 1, 1>, scalar_prefetch = 0 : i64, scratch_operands = 2 : i64, tpu.core_type = #tpu.core_type<tc>, window_params = [{transform_indices = @transform_0, window_bounds = array<i64: 1, 8, 128>}, {transform_indices = @transform_1, window_bounds = array<i64: 8, 32>}, {transform_indices = @transform_2, window_bounds = array<i64: 8, 32>}, {pipeline_mode = #tpu.pipeline_mode<synchronous>, transform_indices = @transform_3, window_bounds = array<i64: 160, 128>}, {pipeline_mode = #tpu.pipeline_mode<synchronous>, transform_indices = @transform_4, window_bounds = array<i64: 1, 128>}, {pipeline_mode = #tpu.pipeline_mode<synchronous>, transform_indices = @transform_5, window_bounds = array<i64: 5, 32>}, {transform_indices = @transform_6, window_bounds = array<i64: 1, 8, 64>}]} {
    %c0_i32 = arith.constant 0 : i32
    %0 = arith.cmpi eq, %arg1, %c0_i32 : i32
    %1 = arith.extui %0 : i1 to i32
    %c0_i32_0 = arith.constant 0 : i32
    %2 = arith.cmpi ne, %1, %c0_i32_0 : i32
    scf.if %2 {
      %c0_34 = arith.constant 0 : index
      %c0_35 = arith.constant 0 : index
      %83 = vector.load %arg3[%c0_34, %c0_35] : memref<8x32xf32, #tpu.memory_space<vmem>>, vector<8x32xf32>
      %c0_36 = arith.constant 0 : index
      %c0_37 = arith.constant 0 : index
      %84 = vector.load %arg9[%c0_36, %c0_37] : memref<8x32xf32, #tpu.memory_space<vmem>>, vector<8x32xf32>
      tpu.vector_store %arg9[%c0_36, %c0_37], %83 {strides = array<i32>} : memref<8x32xf32, #tpu.memory_space<vmem>>, vector<8x32xf32>,
      %c0_38 = arith.constant 0 : index
      %c0_39 = arith.constant 0 : index
      %85 = vector.load %arg4[%c0_38, %c0_39] : memref<8x32xf32, #tpu.memory_space<vmem>>, vector<8x32xf32>
      %c0_40 = arith.constant 0 : index
      %c0_41 = arith.constant 0 : index
      %86 = vector.load %arg10[%c0_40, %c0_41] : memref<8x32xf32, #tpu.memory_space<vmem>>, vector<8x32xf32>
      tpu.vector_store %arg10[%c0_40, %c0_41], %85 {strides = array<i32>} : memref<8x32xf32, #tpu.memory_space<vmem>>, vector<8x32xf32>,
    } else {
    }
    %c0 = arith.constant 0 : index
    %c0_1 = arith.constant 0 : index
    %c0_2 = arith.constant 0 : index
    %3 = vector.load %arg2[%c0, %c0_1, %c0_2] : memref<1x8x128xf32, #tpu.memory_space<vmem>>, vector<1x8x128xf32>
    %4 = vector.shape_cast %3 : vector<1x8x128xf32> to vector<8x128xf32>
    %c0_3 = arith.constant 0 : index
    %c0_4 = arith.constant 0 : index
    %5 = vector.load %arg9[%c0_3, %c0_4] : memref<8x32xf32, #tpu.memory_space<vmem>>, vector<8x32xf32>
    %c0_5 = arith.constant 0 : index
    %c0_6 = arith.constant 0 : index
    %6 = vector.load %arg10[%c0_5, %c0_6] : memref<8x32xf32, #tpu.memory_space<vmem>>, vector<8x32xf32>
    %7 = tpu.concatenate %4, %5 in 1 : vector<8x128xf32>, vector<8x32xf32> -> vector<8x160xf32>
    %c0_7 = arith.constant 0 : index
    %c0_8 = arith.constant 0 : index
    %8 = vector.load %arg5[%c0_7, %c0_8] : memref<160x128xf32, #tpu.memory_space<vmem>>, vector<160x128xf32>
    %cst = arith.constant dense<0.000000e+00> : vector<8x128xf32>
    %9 = tpu.matmul %7, %8, %cst {dimension_numbers = #tpu.dot_dimension_numbers<[1], [0], [0], [1], [0, 0, 1, 1], [], []>, precision = #tpu.contract_precision<fp32>} : vector<8x160xf32>, vector<160x128xf32>, vector<8x128xf32> -> vector<8x128xf32>
    %c0_9 = arith.constant 0 : index
    %c0_10 = arith.constant 0 : index
    %10 = vector.load %arg6[%c0_9, %c0_10] : memref<1x128xf32, #tpu.memory_space<vmem>>, vector<1x128xf32>
    %11 = vector.broadcast %10 : vector<1x128xf32> to vector<8x128xf32>
    %12 = arith.addf %9, %11 : vector<8x128xf32>
    %13 = arith.negf %12 : vector<8x128xf32>
    %14 = math.exp %13 : vector<8x128xf32>
    %cst_11 = arith.constant 1.000000e+00 : f32
    %15 = vector.broadcast %cst_11 : f32 to vector<8x128xf32>
    %16 = arith.addf %15, %14 : vector<8x128xf32>
    %17 = arith.divf %15, %16 : vector<8x128xf32>
    %18 = vector.extract_strided_slice %17 {offsets = [0, 0], sizes = [8, 32], strides = [1, 1]} : vector<8x128xf32> to vector<8x32xf32>
    %19 = vector.extract_strided_slice %17 {offsets = [0, 32], sizes = [8, 32], strides = [1, 1]} : vector<8x128xf32> to vector<8x32xf32>
    %20 = vector.extract_strided_slice %17 {offsets = [0, 64], sizes = [8, 32], strides = [1, 1]} : vector<8x128xf32> to vector<8x32xf32>
    %21 = vector.extract_strided_slice %12 {offsets = [0, 96], sizes = [8, 32], strides = [1, 1]} : vector<8x128xf32> to vector<8x32xf32>
    %22 = math.tanh %21 : vector<8x32xf32>
    %23 = arith.mulf %19, %6 : vector<8x32xf32>
    %24 = arith.mulf %18, %22 : vector<8x32xf32>
    %25 = arith.addf %23, %24 : vector<8x32xf32>
    %26 = math.tanh %25 : vector<8x32xf32>
    %27 = arith.mulf %20, %26 : vector<8x32xf32>
    %28 = vector.extract_strided_slice %4 {offsets = [0, 16], sizes = [8, 1], strides = [1, 1]} : vector<8x128xf32> to vector<8x1xf32>
    %c0_12 = arith.constant 0 : index
    %c0_13 = arith.constant 0 : index
    %29 = vector.load %arg7[%c0_12, %c0_13] : memref<5x32xf32, #tpu.memory_space<vmem>>, vector<1x32xf32>
    %c1 = arith.constant 1 : index
    %c0_14 = arith.constant 0 : index
    %30 = vector.load %arg7[%c1, %c0_14] : memref<5x32xf32, #tpu.memory_space<vmem>>, vector<1x32xf32>
    %c2 = arith.constant 2 : index
    %c0_15 = arith.constant 0 : index
    %31 = vector.load %arg7[%c2, %c0_15] : memref<5x32xf32, #tpu.memory_space<vmem>>, vector<1x32xf32>
    %c3 = arith.constant 3 : index
    %c0_16 = arith.constant 0 : index
    %32 = vector.load %arg7[%c3, %c0_16] : memref<5x32xf32, #tpu.memory_space<vmem>>, vector<1x32xf32>
    %c4 = arith.constant 4 : index
    %c0_17 = arith.constant 0 : index
    %33 = vector.load %arg7[%c4, %c0_17] : memref<5x32xf32, #tpu.memory_space<vmem>>, vector<1x32xf32>
    %34 = vector.broadcast %28 : vector<8x1xf32> to vector<8x32xf32>
    %35 = vector.broadcast %29 : vector<1x32xf32> to vector<8x32xf32>
    %36 = arith.subf %34, %35 : vector<8x32xf32>
    %37 = vector.broadcast %31 : vector<1x32xf32> to vector<8x32xf32>
    %38 = arith.mulf %36, %37 : vector<8x32xf32>
    %cst_18 = arith.constant 0.000000e+00 : f32
    %39 = vector.broadcast %cst_18 : f32 to vector<8x32xf32>
    %40 = arith.cmpf olt, %38, %39 : vector<8x32xf32>
    %41 = math.ceil %38 : vector<8x32xf32>
    %42 = math.floor %38 : vector<8x32xf32>
    %43 = arith.select %40, %41, %42 : vector<8x32xi1>, vector<8x32xf32>
    %44 = vector.broadcast %30 : vector<1x32xf32> to vector<8x32xf32>
    %45 = arith.mulf %43, %44 : vector<8x32xf32>
    %46 = arith.subf %36, %45 : vector<8x32xf32>
    %47 = vector.broadcast %31 : vector<1x32xf32> to vector<8x32xf32>
    %48 = arith.mulf %46, %47 : vector<8x32xf32>
    %cst_19 = arith.constant 2.000000e+00 : f32
    %49 = vector.broadcast %cst_19 : f32 to vector<8x32xf32>
    %50 = arith.mulf %49, %48 : vector<8x32xf32>
    %51 = vector.broadcast %33 : vector<1x32xf32> to vector<8x32xf32>
    %52 = arith.mulf %50, %51 : vector<8x32xf32>
    %cst_20 = arith.constant 2.000000e+00 : f32
    %53 = vector.broadcast %cst_20 : f32 to vector<8x32xf32>
    %54 = arith.subf %53, %52 : vector<8x32xf32>
    %cst_21 = arith.constant 1.000000e-03 : f32
    %55 = vector.broadcast %cst_21 : f32 to vector<8x32xf32>
    %56 = arith.mulf %55, %48 : vector<8x32xf32>
    %57 = vector.broadcast %32 : vector<1x32xf32> to vector<8x32xf32>
    %58 = arith.cmpf olt, %48, %57 : vector<8x32xf32>
    %59 = arith.select %58, %54, %56 : vector<8x32xi1>, vector<8x32xf32>
    %cst_22 = arith.constant 5.000000e-01 : f32
    %60 = vector.broadcast %cst_22 : f32 to vector<1x32xf32>
    %61 = arith.mulf %60, %32 : vector<1x32xf32>
    %62 = vector.broadcast %61 : vector<1x32xf32> to vector<8x32xf32>
    %63 = arith.cmpf olt, %48, %62 : vector<8x32xf32>
    %64 = arith.select %63, %52, %59 : vector<8x32xi1>, vector<8x32xf32>
    %65 = arith.mulf %64, %25 : vector<8x32xf32>
    %cst_23 = arith.constant 1.000000e+00 : f32
    %66 = vector.broadcast %cst_23 : f32 to vector<8x32xf32>
    %67 = arith.subf %66, %64 : vector<8x32xf32>
    %68 = arith.mulf %67, %6 : vector<8x32xf32>
    %69 = arith.addf %65, %68 : vector<8x32xf32>
    %70 = arith.mulf %64, %27 : vector<8x32xf32>
    %cst_24 = arith.constant 1.000000e+00 : f32
    %71 = vector.broadcast %cst_24 : f32 to vector<8x32xf32>
    %72 = arith.subf %71, %64 : vector<8x32xf32>
    %73 = arith.mulf %72, %5 : vector<8x32xf32>
    %74 = arith.addf %70, %73 : vector<8x32xf32>
    %c0_25 = arith.constant 0 : index
    %c0_26 = arith.constant 0 : index
    %75 = vector.load %arg9[%c0_25, %c0_26] : memref<8x32xf32, #tpu.memory_space<vmem>>, vector<8x32xf32>
    tpu.vector_store %arg9[%c0_25, %c0_26], %74 {strides = array<i32>} : memref<8x32xf32, #tpu.memory_space<vmem>>, vector<8x32xf32>,
    %c0_27 = arith.constant 0 : index
    %c0_28 = arith.constant 0 : index
    %76 = vector.load %arg10[%c0_27, %c0_28] : memref<8x32xf32, #tpu.memory_space<vmem>>, vector<8x32xf32>
    tpu.vector_store %arg10[%c0_27, %c0_28], %69 {strides = array<i32>} : memref<8x32xf32, #tpu.memory_space<vmem>>, vector<8x32xf32>,
    %c0_29 = arith.constant 0 : index
    %c0_30 = arith.constant 0 : index
    %c0_31 = arith.constant 0 : index
    %77 = vector.load %arg8[%c0_29, %c0_30, %c0_31] : memref<1x8x64xf32, #tpu.memory_space<vmem>>, vector<1x8x32xf32>
    %78 = vector.shape_cast %77 : vector<1x8x32xf32> to vector<8x32xf32>
    %79 = vector.shape_cast %74 : vector<8x32xf32> to vector<1x8x32xf32>
    tpu.vector_store %arg8[%c0_29, %c0_30, %c0_31], %79 {strides = array<i32>} : memref<1x8x64xf32, #tpu.memory_space<vmem>>, vector<1x8x32xf32>,
    %c0_32 = arith.constant 0 : index
    %c0_33 = arith.constant 0 : index
    %c32 = arith.constant 32 : index
    %80 = vector.load %arg8[%c0_32, %c0_33, %c32] : memref<1x8x64xf32, #tpu.memory_space<vmem>>, vector<1x8x32xf32>
    %81 = vector.shape_cast %80 : vector<1x8x32xf32> to vector<8x32xf32>
    %82 = vector.shape_cast %69 : vector<8x32xf32> to vector<1x8x32xf32>
    tpu.vector_store %arg8[%c0_32, %c0_33, %c32], %82 {strides = array<i32>} : memref<1x8x64xf32, #tpu.memory_space<vmem>>, vector<1x8x32xf32>,
    return
  }
  func.func @transform_0(%arg0: i32, %arg1: i32) -> (i32, i32, i32) {
    %c0_i32 = arith.constant 0 : i32
    %c0_i32_0 = arith.constant 0 : i32
    return %arg1, %arg0, %c0_i32 : i32, i32, i32
  }
  func.func @transform_1(%arg0: i32, %arg1: i32) -> (i32, i32) {
    %c0_i32 = arith.constant 0 : i32
    %c0_i32_0 = arith.constant 0 : i32
    return %arg0, %c0_i32 : i32, i32
  }
  func.func @transform_2(%arg0: i32, %arg1: i32) -> (i32, i32) {
    %c0_i32 = arith.constant 0 : i32
    %c0_i32_0 = arith.constant 0 : i32
    return %arg0, %c0_i32 : i32, i32
  }
  func.func @transform_3(%arg0: i32, %arg1: i32) -> (i32, i32) {
    %c0_i32 = arith.constant 0 : i32
    %c0_i32_0 = arith.constant 0 : i32
    %c0_i32_1 = arith.constant 0 : i32
    return %c0_i32, %c0_i32_0 : i32, i32
  }
  func.func @transform_4(%arg0: i32, %arg1: i32) -> (i32, i32) {
    %c0_i32 = arith.constant 0 : i32
    %c0_i32_0 = arith.constant 0 : i32
    %c0_i32_1 = arith.constant 0 : i32
    return %c0_i32, %c0_i32_0 : i32, i32
  }
  func.func @transform_5(%arg0: i32, %arg1: i32) -> (i32, i32) {
    %c0_i32 = arith.constant 0 : i32
    %c0_i32_0 = arith.constant 0 : i32
    %c0_i32_1 = arith.constant 0 : i32
    return %c0_i32, %c0_i32_0 : i32, i32
  }
  func.func @transform_6(%arg0: i32, %arg1: i32) -> (i32, i32, i32) {
    %c0_i32 = arith.constant 0 : i32
    %c0_i32_0 = arith.constant 0 : i32
    return %arg1, %arg0, %c0_i32 : i32, i32, i32
  }
}

</mosaic_0001>

<bundles_post_ra>
// kernel: tpu_custom_call.1
= control target key start
LH: loop header
LB: loop body
LE: loop exit
PB: predicated region body
PF: predicated region fallthrough
CT: control target
= control target key end

     0   :  { %11 = vsyncpa [#allocation5], 0  ;;  %s1629_s0 = inlined_call_operand.hbm [shape: f32[1,8,128], index: 0, kind: input, shape index: {}]   ;;  %s1630_s1 = inlined_call_operand.hbm [shape: f32[8,32], index: 1, kind: input, shape index: {}]   ;;  %s1631_s2 = inlined_call_operand.hbm [shape: f32[8,32], index: 2, kind: input, shape index: {}]   ;;  %s1632_s3 = inlined_call_operand.hbm [shape: f32[160,128], index: 3, kind: input, shape index: {}]   ;;  %s1633_s4 = inlined_call_operand.vmem [shape: f32[1,128], index: 4, kind: input, shape index: {}]   ;;  %s1634_s5 = inlined_call_operand.vmem [shape: f32[5,32], index: 5, kind: input, shape index: {}]   ;;  %s1635_s6 = inlined_call_operand.hbm [shape: f32[1,8,64], index: 6, kind: output, shape index: {}]  }
   0x1   :  { %12 = vsyncpa [#allocation8], 0 }
   0x2   :  { %13 = vsyncpa [#allocation11], 0 }
   0x3   :  { %14 = vsyncpa [#allocation6], 0  ;;  %s1079_s21 = smov [#allocation7]   ;;  %s1080_s23 = smov [#allocation4]  }
   0x4   :  { %s31_s22 = sshll.u32 %s1079_s21, 4  ;;  %s21_s24 = sshll.u32 %s1080_s23, 4  ;;  %s32_s22 = int_to_ptr.vmem [resolvable:$true] %s31_s22  ;;  %s22_s24 = int_to_ptr.vmem [resolvable:$true] %s21_s24 }
   0x5   :  { %s979_s25 = scalar_lea.vmem %s32_s22, 128  ;;  %p984_p1 = scmp.lt.s32.totalorder %s32_s22, %s32_s22 }
   0x6   :  { %p980_p0 = scmp.ne.s32.totalorder %s32_s22, %s979_s25  ;;  %p985_p2 = scmp.lt.s32.totalorder %s979_s25, %s979_s25 }
   0x8   :  { %p986_p3 = por %p985_p2, %p984_p1 }
   0xa   :  { %p987_p4 = pnand %p986_p3, %p980_p0 }
   0xc   :  { %990 = shalt.err (!%p987_p4)
}
   0xd   :  { %34 = dma.hbm_to_vmem [thread:$0]  %s1630_s1, 128, %s32_s22, [#allocation8]  }
   0xe   :  { %s999_s28 = scalar_lea.vmem %s22_s24, 128  ;;  %p1004_p6 = scmp.lt.s32.totalorder %s22_s24, %s22_s24 }
   0xf   :  { %p1000_p5 = scmp.ne.s32.totalorder %s22_s24, %s999_s28  ;;  %p1005_p7 = scmp.lt.s32.totalorder %s999_s28, %s999_s28 }
  0x11   :  { %p1006_p8 = por %p1005_p7, %p1004_p6 }
  0x13   :  { %p1007_p9 = pnand %p1006_p8, %p1000_p5 }
  0x15   :  { %1010 = shalt.err (!%p1007_p9)
}
  0x16   :  { %24 = dma.hbm_to_vmem [thread:$0]  %s1629_s0, 128, %s22_s24, [#allocation5]  }
  0x17   :  { %s1081_s7 = smov [#allocation9]   ;;  %s1082_s9 = smov [#allocation10]  }
  0x18   :  { %s41_s8 = sshll.u32 %s1081_s7, 4  ;;  %s50_s10 = sshll.u32 %s1082_s9, 4  ;;  %s42_s8 = int_to_ptr.vmem [resolvable:$true] %s41_s8  ;;  %s51_s10 = int_to_ptr.vmem [resolvable:$true] %s50_s10 }
  0x19   :  { %s1019_s11 = scalar_lea.vmem %s42_s8, 128  ;;  %p1024_p11 = scmp.lt.s32.totalorder %s42_s8, %s42_s8 }
  0x1a   :  { %p1020_p10 = scmp.ne.s32.totalorder %s42_s8, %s1019_s11  ;;  %p1025_p12 = scmp.lt.s32.totalorder %s1019_s11, %s1019_s11 }
  0x1c   :  { %p1026_p13 = por %p1025_p12, %p1024_p11 }
  0x1e   :  { %p1027_p0 = pnand %p1026_p13, %p1020_p10 }
  0x20   :  { %1030 = shalt.err (!%p1027_p0)
}
  0x21   :  { %44 = dma.hbm_to_vmem [thread:$0]  %s1631_s2, 128, %s42_s8, [#allocation8]  }
  0x22   :  { %s1039_s13 = scalar_lea.vmem %s51_s10, 2560  ;;  %p1044_p2 = scmp.lt.s32.totalorder %s51_s10, %s51_s10 }
  0x23   :  { %p1040_p1 = scmp.ne.s32.totalorder %s51_s10, %s1039_s13  ;;  %p1045_p3 = scmp.lt.s32.totalorder %s1039_s13, %s1039_s13 }
  0x25   :  { %p1046_p4 = por %p1045_p3, %p1044_p2 }
  0x27   :  { %p1047_p5 = pnand %p1046_p4, %p1040_p1 }
  0x29   :  { %1050 = shalt.err (!%p1047_p5)
}
  0x2a   :  { %s1083_s0 = smov 128   ;;  %s1084_s14 = smov 8  }
  0x2b   :  { %56 = dma.hbm_to_vmem [thread:$0]  %s1632_s3, 2560, %s51_s10, [#allocation11], %s1083_s0, %s1083_s0, %s1084_s14  }
  0x2c   :  { %1071 = dma.done.wait [#allocation5], 128  }
  0x2d   :  { %1072 = vsyncadd [#allocation5], 4294967168 }
  0x2e   :  { %1073 = dma.done.wait [#allocation8], 256  }
  0x2f   :  { %1074 = vsyncadd [#allocation8], 4294967040 }
  0x30   :  { %1075 = dma.done.wait [#allocation11], 2560  }
  0x31   :  { %1076 = vsyncadd [#allocation11], 4294964736  ;;  %v1085_v0 = vmov 0.0   ;;  %v100_v1 = vld [vmem:[#allocation10 + $0x78] sm:$0xff]  ;;  %v99_v2 = vld [vmem:[#allocation10 + $0x70] sm:$0xff]  ;;  %vm78_vm0 = vcmask 261120  }
  0x32   :  { %116 = vmatprep.subr.mxu0 %v1085_v0  ;;  %216 = vmatprep.subr.mxu1 %v1085_v0  ;;  %v98_v3 = vld [vmem:[#allocation10 + $0x68] sm:$0xff]  ;;  %v1140_v4 = vand.u32 4294901760, %v100_v1  ;;  %v1142_v5 = vand.u32 4294901760, %v99_v2  ;;  %v97_v7 = vld [vmem:[#allocation10 + $0x60] sm:$0xff]  ;;  %v96_v8 = vld [vmem:[#allocation10 + $0x58] sm:$0xff]  ;;  %s1088_s17 = smov 96  }
  0x33   :  { %v1144_v6 = vand.u32 4294901760, %v98_v3  ;;  %v95_v9 = vld [vmem:[#allocation10 + $0x50] sm:$0xff]  ;;  %v1146_v10 = vand.u32 4294901760, %v97_v7  ;;  %v1148_v11 = vand.u32 4294901760, %v96_v8  ;;  %v94_v13 = vld [vmem:[#allocation10 + $0x48] sm:$0xff]  ;;  %v93_v14 = vld [vmem:[#allocation10 + $0x40] sm:$0xff] }
  0x34   :  { %v1150_v12 = vand.u32 4294901760, %v95_v9  ;;  %118 = vmatpush1.msra.mxu0 %v1140_v4  ;;  %v1154_v15 = vsub.f32 %v100_v1, %v1140_v4  ;;  %v1157_v16 = vsub.f32 %v99_v2, %v1142_v5  ;;  %v1159_v17 = vand.u32 4294901760, %v94_v13  ;;  %v92_v19 = vld [vmem:[#allocation10 + $0x38] sm:$0xff]  ;;  %v91_v26 = vld [vmem:[#allocation10 + $0x30] sm:$0xff]  ;;  %v90_v34 = vld [vmem:[#allocation10 + $0x28] sm:$0xff]  ;;  %s1090_s28 = smov [#allocation12]  }
  0x35   :  { %v1162_v18 = vsub.f32 %v98_v3, %v1144_v6  ;;  %119 = vmatprep.subr.mxu0 %v1085_v0  ;;  %v1166_v20 = vsub.f32 %v97_v7, %v1146_v10  ;;  %v1169_v21 = vsub.f32 %v96_v8, %v1148_v11  ;;  %v1175_v25 = vand.u32 4294901760, %v93_v14  ;;  %v77_v36 = vld [vmem:[#allocation7] sm:$0xff]  ;;  %v80_v37 = vld [vmem:[#allocation9] sm:$0xff]  ;;  %v89_v43 = vld [vmem:[#allocation10 + $0x20] sm:$0xff]  ;;  %s932_s29 = sshll.u32 %s1090_s28, 4  ;;  %s933_s29 = int_to_ptr.vmem [resolvable:$true] %s932_s29 }
  0x36   :  { %121 = vmatpush1.msra.mxu0 %v1142_v5  ;;  %v219_v22 = vand.u32 4294901760, %v1154_v15  ;;  %v226_v23 = vand.u32 4294901760, %v1157_v16  ;;  %v1179_v28 = vand.u32 4294901760, %v92_v19  ;;  %v1183_v30 = vsub.f32 %v95_v9, %v1150_v12  ;;  %79 = vst.msk [vmem:[#allocation2] sm:$0xff] %vm78_vm0, %v77_v36  ;;  %81 = vst.msk [vmem:[#allocation3] sm:$0xff] %vm78_vm0, %v80_v37  ;;  %v88_v51 = vld [vmem:[#allocation10 + $0x18] sm:$0xff]  ;;  %p1056_p7 = scmp.lt.s32.totalorder %s933_s29, %s933_s29 }
  0x37   :  { %v233_v24 = vand.u32 4294901760, %v1162_v18  ;;  %122 = vmatprep.subr.mxu0 %v1085_v0  ;;  %v1648_v27 = vand.u32 4294901760, %v1166_v20  ;;  %v1645_v29 = vand.u32 4294901760, %v1169_v21  ;;  %v1196_v35 = vsub.f32 %v94_v13, %v1159_v17  ;;  %v87_v55 = vld [vmem:[#allocation10 + $0x10] sm:$0xff]  ;;  %v86_v63 = vld [vmem:[#allocation10 + $0x8] sm:$0xff]  ;;  %v85_v7 = vld [vmem:[#allocation10] sm:$0xff] }
  0x38   :  { %124 = vmatpush1.msra.mxu0 %v1144_v6  ;;  %v220_v31 = vsub.f32 %v1154_v15, %v219_v22  ;;  %v227_v32 = vsub.f32 %v1157_v16, %v226_v23  ;;  %v1199_v38 = vand.u32 4294901760, %v91_v26  ;;  %v1644_v42 = vand.u32 4294901760, %v1183_v30  ;;  %s1051_s30 = scalar_lea.vmem %s933_s29, 128 }
  0x39   :  { %v234_v33 = vsub.f32 %v1162_v18, %v233_v24  ;;  %125 = vmatprep.subr.mxu0 %v1085_v0  ;;  %v241_v41 = vsub.f32 %v1166_v20, %v1648_v27  ;;  %v1209_v44 = vand.u32 4294901760, %v90_v34  ;;  %v1212_v45 = vsub.f32 %v93_v14, %v1175_v25  ;;  %p1052_p6 = scmp.ne.s32.totalorder %s933_s29, %s1051_s30  ;;  %p1057_p8 = scmp.lt.s32.totalorder %s1051_s30, %s1051_s30 }
  0x3a   :  { %127 = vmatpush1.msra.mxu0 %v1146_v10  ;;  %v221_v39 = vand.u32 4294901760, %v220_v31  ;;  %v228_v40 = vand.u32 4294901760, %v227_v32  ;;  %v248_v47 = vsub.f32 %v1169_v21, %v1645_v29  ;;  %v1642_v48 = vand.u32 4294901760, %v1196_v35 }
  0x3b   :  { %128 = vmatprep.subr.mxu0 %v1085_v0  ;;  %v235_v46 = vand.u32 4294901760, %v234_v33  ;;  %v1220_v49 = vsub.f32 %v92_v19, %v1179_v28  ;;  %v1224_v50 = vand.u32 4294901760, %v89_v43  ;;  %v242_v52 = vand.u32 4294901760, %v241_v41  ;;  %p1058_p9 = por %p1057_p8, %p1056_p7 }
  0x3c   :  { %130 = vmatpush1.msra.mxu0 %v1148_v11  ;;  %222 = vmatpush1.msra.mxu1 %v221_v39  ;;  %v255_v53 = vsub.f32 %v1183_v30, %v1644_v42  ;;  %v1641_v54 = vand.u32 4294901760, %v1212_v45  ;;  %v1232_v56 = vsub.f32 %v91_v26, %v1199_v38  ;;  %v249_v58 = vand.u32 4294901760, %v248_v47 }
  0x3d   :  { %131 = vmatprep.subr.mxu0 %v1085_v0  ;;  %223 = vmatprep.subr.mxu1 %v1085_v0  ;;  %v1640_v57 = vand.u32 4294901760, %v1220_v49  ;;  %v262_v59 = vsub.f32 %v1196_v35, %v1642_v48  ;;  %v1241_v60 = vand.u32 4294901760, %v88_v51  ;;  %v1244_v61 = vsub.f32 %v90_v34, %v1209_v44  ;;  %v1258_v9 = vld [vmem:[#allocation2] sm:$0xff]  ;;  %v1278_v34 = vld [vmem:[#allocation4] sm:$0xff]  ;;  %p1059_p10 = pnand %p1058_p9, %p1052_p6 }
  0x3e   :  { %133 = vmatpush1.msra.mxu0 %v1150_v12  ;;  %229 = vmatpush1.msra.mxu1 %v228_v40  ;;  %v1248_v62 = vand.u32 4294901760, %v87_v55  ;;  %v256_v1 = vand.u32 4294901760, %v255_v53  ;;  %v269_v2 = vsub.f32 %v1212_v45, %v1641_v54  ;;  %v1638_v3 = vand.u32 4294901760, %v1232_v56  ;;  %v104_v40 = vld [vmem:[#allocation10 + $0x98] sm:$0xff] }
  0x3f   :  { %134 = vmatprep.subr.mxu0 %v1085_v0  ;;  %230 = vmatprep.subr.mxu1 %v1085_v0  ;;  %v1256_v8 = vsub.f32 %v89_v43, %v1224_v50  ;;  %v276_v13 = vsub.f32 %v1220_v49, %v1640_v57  ;;  %v263_v14 = vand.u32 4294901760, %v262_v59  ;;  %v1266_v19 = vand.u32 4294901760, %v86_v63 }
  0x40   :  { %136 = vmatpush1.msra.mxu0 %v1159_v17  ;;  %236 = vmatpush1.msra.mxu1 %v235_v46  ;;  %v1636_v26 = vand.u32 4294901760, %v1244_v61  ;;  %v1270_v31 = vsub.f32 %v88_v51, %v1241_v60  ;;  %v1274_v32 = vand.u32 4294901760, %v85_v7  ;;  %v114_v33 = vsel %vm78_vm0, %v1258_v9, 0 }
  0x41   :  { %137 = vmatprep.subr.mxu0 %v1085_v0  ;;  %237 = vmatprep.subr.mxu1 %v1085_v0  ;;  %v270_v36 = vand.u32 4294901760, %v269_v2  ;;  %v283_v37 = vsub.f32 %v1232_v56, %v1638_v3  ;;  %v1637_v39 = vand.u32 4294901760, %v1256_v8  ;;  %v1286_v41 = vsub.f32 %v87_v55, %v1248_v62  ;;  %v102_v2 = vld [vmem:[#allocation10 + $0x88] sm:$0xff] }
  0x42   :  { %139 = vmatpush1.msra.mxu0 %v1175_v25  ;;  %243 = vmatpush1.msra.mxu1 %v242_v52  ;;  %v277_v43 = vand.u32 4294901760, %v276_v13  ;;  %v1290_v46 = vand.u32 4294901760, %v114_v33  ;;  %v290_v47 = vsub.f32 %v1244_v61, %v1636_v26  ;;  %v1639_v51 = vand.u32 4294901760, %v1270_v31  ;;  %v103_v52 = vld [vmem:[#allocation10 + $0x90] sm:$0xff] }
  0x43   :  { %140 = vmatprep.subr.mxu0 %v1085_v0  ;;  %244 = vmatprep.subr.mxu1 %v1085_v0  ;;  %v1298_v53 = vsub.f32 %v86_v63, %v1266_v19  ;;  %v1301_v55 = vand.u32 4294901760, %v1278_v34  ;;  %v284_v59 = vand.u32 4294901760, %v283_v37  ;;  %v1643_v63 = vand.u32 4294901760, %v1286_v41 }
  0x44   :  { %142 = vmatpush1.msra.mxu0 %v1179_v28  ;;  %250 = vmatpush1.msra.mxu1 %v249_v58  ;;  %v1305_v58 = vand.u32 4294901760, %v104_v40  ;;  %v1313_v13 = vsub.f32 %v85_v7, %v1274_v32  ;;  %v1320_v26 = vsub.f32 %v114_v33, %v1290_v46  ;;  %v304_v37 = vsub.f32 %v1270_v31, %v1639_v51 }
  0x45   :  { %143 = vmatprep.subr.mxu0 %v1085_v0  ;;  %251 = vmatprep.subr.mxu1 %v1085_v0  ;;  %v1646_v7 = vand.u32 4294901760, %v1298_v53  ;;  %v1329_v3 = vsub.f32 %v1278_v34, %v1301_v55  ;;  %v1333_v33 = vand.u32 4294901760, %v102_v2  ;;  %v311_v51 = vsub.f32 %v1286_v41, %v1643_v63 }
  0x46   :  { %145 = vmatpush1.msra.mxu0 %v1199_v38  ;;  %257 = vmatpush1.msra.mxu1 %v256_v1  ;;  %v297_v1 = vsub.f32 %v1256_v8, %v1637_v39  ;;  %v101_v39 = vld [vmem:[#allocation10 + $0x80] sm:$0xff]  ;;  %v1647_v57 = vand.u32 4294901760, %v1313_v13  ;;  %v202_v48 = vand.u32 4294901760, %v1320_v26  ;;  %vm924_vm4 = vcmask 523520  }
  0x47   :  { %146 = vmatprep.subr.mxu0 %v1085_v0  ;;  %258 = vmatprep.subr.mxu1 %v1085_v0  ;;  %v1345_v54 = vand.u32 4294901760, %v101_v39  ;;  %v1649_v63 = vand.u32 4294901760, %v1329_v3  ;;  %v1360_v29 = vsub.f32 %v102_v2, %v1333_v33 }
  0x48   :  { %148 = vmatpush1.msra.mxu0 %v1209_v44  ;;  %264 = vmatpush1.msra.mxu1 %v263_v14  ;;  %v1317_v14 = vand.u32 4294901760, %v103_v52 }
  0x49   :  { %149 = vmatprep.subr.mxu0 %v1085_v0  ;;  %265 = vmatprep.subr.mxu1 %v1085_v0  ;;  %v1373_v2 = vsub.f32 %v101_v39, %v1345_v54  ;;  %v369_v27 = vand.u32 4294901760, %v1360_v29 }
  0x4a   :  { %151 = vmatpush1.msra.mxu0 %v1224_v50  ;;  %271 = vmatpush1.msra.mxu1 %v270_v36  ;;  %v291_v36 = vand.u32 4294901760, %v290_v47  ;;  %v298_v47 = vand.u32 4294901760, %v297_v1  ;;  %v318_v1 = vsub.f32 %v1298_v53, %v1646_v7 }
  0x4b   :  { %152 = vmatprep.subr.mxu0 %v1085_v0  ;;  %272 = vmatprep.subr.mxu1 %v1085_v0 }
  0x4c   :  { %154 = vmatpush1.msra.mxu0 %v1241_v60  ;;  %278 = vmatpush1.msra.mxu1 %v277_v43  ;;  %v1336_v43 = vsub.f32 %v104_v40, %v1305_v58  ;;  %v1349_v40 = vsub.f32 %v103_v52, %v1317_v14  ;;  %v312_v52 = vand.u32 4294901760, %v311_v51  ;;  %v319_v51 = vand.u32 4294901760, %v318_v1 }
  0x4d   :  { %155 = vmatprep.subr.mxu0 %v1085_v0  ;;  %279 = vmatprep.subr.mxu1 %v1085_v0 }
  0x4e   :  { %157 = vmatpush1.msra.mxu0 %v1248_v62  ;;  %285 = vmatpush1.msra.mxu1 %v284_v59  ;;  %v305_v59 = vand.u32 4294901760, %v304_v37  ;;  %v1650_v42 = vand.u32 4294901760, %v1336_v43  ;;  %v203_v37 = vsub.f32 %v1320_v26, %v202_v48  ;;  %v362_v7 = vand.u32 4294901760, %v1349_v40 }
  0x4f   :  { %158 = vmatprep.subr.mxu0 %v1085_v0  ;;  %286 = vmatprep.subr.mxu1 %v1085_v0 }
  0x50   :  { %160 = vmatpush1.msra.mxu0 %v1266_v19  ;;  %292 = vmatpush1.msra.mxu1 %v291_v36  ;;  %v325_v36 = vsub.f32 %v1313_v13, %v1647_v57  ;;  %v356_v57 = vsub.f32 %v1336_v43, %v1650_v42  ;;  %v363_v1 = vsub.f32 %v1349_v40, %v362_v7 }
  0x51   :  { %161 = vmatprep.subr.mxu0 %v1085_v0  ;;  %293 = vmatprep.subr.mxu1 %v1085_v0 }
  0x52   :  { %163 = vmatpush1.msra.mxu0 %v1274_v32  ;;  %299 = vmatpush1.msra.mxu1 %v298_v47  ;;  %v209_v47 = vsub.f32 %v1329_v3, %v1649_v63  ;;  %v326_v39 = vand.u32 4294901760, %v325_v36  ;;  %v376_v63 = vand.u32 4294901760, %v1373_v2  ;;  %v370_v36 = vsub.f32 %v1360_v29, %v369_v27 }
  0x53   :  { %188 = vmatprep.subr.mxu0 %v1085_v0  ;;  %300 = vmatprep.subr.mxu1 %v1085_v0 }
  0x54   :  { %190 = vmatpush2.msra.mxu0 %v1305_v58  ;;  %306 = vmatpush1.msra.mxu1 %v305_v59  ;;  %v204_v59 = vand.u32 4294901760, %v203_v37  ;;  %v210_v42 = vand.u32 4294901760, %v209_v47  ;;  %v364_v37 = vand.u32 4294901760, %v363_v1 }
  0x55   :  { %191 = vmatprep.subr.mxu0 %v1085_v0  ;;  %307 = vmatprep.subr.mxu1 %v1085_v0 }
  0x56   :  { %193 = vmatpush2.msra.mxu0 %v1317_v14  ;;  %313 = vmatpush1.msra.mxu1 %v312_v52  ;;  %v357_v52 = vand.u32 4294901760, %v356_v57  ;;  %v371_v57 = vand.u32 4294901760, %v370_v36 }
  0x57   :  { %194 = vmatprep.subr.mxu0 %v1085_v0  ;;  %314 = vmatprep.subr.mxu1 %v1085_v0 }
  0x58   :  { %196 = vmatpush2.msra.mxu0 %v1333_v33  ;;  %320 = vmatpush1.msra.mxu1 %v319_v51  ;;  %v377_v51 = vsub.f32 %v1373_v2, %v376_v63 }
  0x59   :  { %197 = vmatprep.subr.mxu0 %v1085_v0  ;;  %321 = vmatprep.subr.mxu1 %v1085_v0 }
  0x5a   :  { %199 = vmatpush2.msra.mxu0 %v1345_v54  ;;  %327 = vmatpush1.msra.mxu1 %v326_v39  ;;  %v378_v47 = vand.u32 4294901760, %v377_v51 }
  0x5b   :  { %205 = vmatprep.mubr.f32.mxu0 %v204_v59  ;;  %352 = vmatprep.subr.mxu1 %v1085_v0  ;;  %v947_v59 = vld [vmem:[%s1634_s5 + $0x1] ss:$0 sm:$0xff] }
  0x5c   :  { %388 = vmatprep.subr.mxu0 %v1085_v0  ;;  %211 = vmatmul.mubr.f32.vlgmr.msra.gmra.mxu0 %v210_v42 }
  0x5d   :  { %358 = vmatpush2.msra.mxu1 %v357_v52  ;;  %391 = vmatpush1.msra.mxu0 %v1154_v15  ;;  %v1651_v15 = vand.u32 4294901760, %v1166_v20 }
  0x5e   :  { %359 = vmatprep.subr.mxu1 %v1085_v0  ;;  %392 = vmatprep.subr.mxu0 %v1085_v0 }
  0x5f   :  { %365 = vmatpush2.msra.mxu1 %v364_v37  ;;  %395 = vmatpush1.msra.mxu0 %v1157_v16  ;;  %v1652_v16 = vand.u32 4294901760, %v1329_v3  ;;  %v889_v37 = vlaneseq }
  0x60   :  { %366 = vmatprep.subr.mxu1 %v1085_v0  ;;  %396 = vmatprep.subr.mxu0 %v1085_v0 }
  0x61   :  { %372 = vmatpush2.msra.mxu1 %v371_v57  ;;  %399 = vmatpush1.msra.mxu0 %v1162_v18  ;;  %v1653_v18 = vand.u32 4294901760, %v1169_v21  ;;  %v890_v57 = vshrl.u32 %v889_v37, 7 }
  0x62   :  { %373 = vmatprep.subr.mxu1 %v1085_v0  ;;  %400 = vmatprep.subr.mxu0 %v1085_v0 }
  0x63   :  { %379 = vmatpush2.msra.mxu1 %v378_v47  ;;  %381 = vmatprep.mubr.f32.mxu1 %v1290_v46 }
  0x64   :  { %403 = vmatpush1.msra.mxu0 %v1166_v20  ;;  %383 = vmatmul.mubr.f32.vlgmr.msra.gmra.mxu1 %v1301_v55  ;;  %v1655_v20 = vand.u32 4294901760, %v1196_v35 }
  0x65   :  { %404 = vmatprep.subr.mxu0 %v1085_v0  ;;  %502 = vmatprep.subr.mxu1 %v1085_v0 }
  0x66   :  { %407 = vmatpush1.msra.mxu0 %v1169_v21  ;;  %504 = vmatpush1.msra.mxu1 %v1140_v4  ;;  %v1663_v21 = vand.u32 4294901760, %v1298_v53 }
  0x67   :  { %408 = vmatprep.subr.mxu0 %v1085_v0  ;;  %505 = vmatprep.subr.mxu1 %v1085_v0 }
  0x68   :  { %411 = vmatpush1.msra.mxu0 %v1183_v30  ;;  %507 = vmatpush1.msra.mxu1 %v1142_v5 }
  0x69   :  { %412 = vmatprep.subr.mxu0 %v1085_v0  ;;  %508 = vmatprep.subr.mxu1 %v1085_v0 }
  0x6a   :  { %415 = vmatpush1.msra.mxu0 %v1196_v35  ;;  %510 = vmatpush1.msra.mxu1 %v1144_v6 }
  0x6b   :  { %416 = vmatprep.subr.mxu0 %v1085_v0  ;;  %511 = vmatprep.subr.mxu1 %v1085_v0 }
  0x6c   :  { %419 = vmatpush1.msra.mxu0 %v1212_v45  ;;  %513 = vmatpush1.msra.mxu1 %v1146_v10 }
  0x6d   :  { %420 = vmatprep.subr.mxu0 %v1085_v0  ;;  %514 = vmatprep.subr.mxu1 %v1085_v0 }
  0x6e   :  { %423 = vmatpush1.msra.mxu0 %v1220_v49  ;;  %516 = vmatpush1.msra.mxu1 %v1148_v11 }
  0x6f   :  { %424 = vmatprep.subr.mxu0 %v1085_v0  ;;  %517 = vmatprep.subr.mxu1 %v1085_v0 }
  0x70   :  { %427 = vmatpush1.msra.mxu0 %v1232_v56  ;;  %519 = vmatpush1.msra.mxu1 %v1150_v12 }
  0x71   :  { %428 = vmatprep.subr.mxu0 %v1085_v0  ;;  %520 = vmatprep.subr.mxu1 %v1085_v0 }
  0x72   :  { %431 = vmatpush1.msra.mxu0 %v1244_v61  ;;  %522 = vmatpush1.msra.mxu1 %v1159_v17 }
  0x73   :  { %432 = vmatprep.subr.mxu0 %v1085_v0  ;;  %523 = vmatprep.subr.mxu1 %v1085_v0 }
  0x74   :  { %435 = vmatpush1.msra.mxu0 %v1256_v8  ;;  %525 = vmatpush1.msra.mxu1 %v1175_v25 }
  0x75   :  { %436 = vmatprep.subr.mxu0 %v1085_v0  ;;  %526 = vmatprep.subr.mxu1 %v1085_v0 }
  0x76   :  { %439 = vmatpush1.msra.mxu0 %v1270_v31  ;;  %528 = vmatpush1.msra.mxu1 %v1179_v28 }
  0x77   :  { %440 = vmatprep.subr.mxu0 %v1085_v0  ;;  %529 = vmatprep.subr.mxu1 %v1085_v0 }
  0x78   :  { %443 = vmatpush1.msra.mxu0 %v1286_v41  ;;  %531 = vmatpush1.msra.mxu1 %v1199_v38 }
  0x79   :  { %444 = vmatprep.subr.mxu0 %v1085_v0  ;;  %532 = vmatprep.subr.mxu1 %v1085_v0 }
  0x7a   :  { %447 = vmatpush1.msra.mxu0 %v1298_v53  ;;  %534 = vmatpush1.msra.mxu1 %v1209_v44 }
  0x7b   :  { %448 = vmatprep.subr.mxu0 %v1085_v0  ;;  %535 = vmatprep.subr.mxu1 %v1085_v0 }
  0x7c   :  { %451 = vmatpush1.msra.mxu0 %v1313_v13  ;;  %537 = vmatpush1.msra.mxu1 %v1224_v50 }
  0x7d   :  { %476 = vmatprep.subr.mxu0 %v1085_v0  ;;  %538 = vmatprep.subr.mxu1 %v1085_v0 }
  0x7e   :  { %479 = vmatpush2.msra.mxu0 %v1336_v43  ;;  %540 = vmatpush1.msra.mxu1 %v1241_v60 }
  0x7f   :  { %480 = vmatprep.subr.mxu0 %v1085_v0  ;;  %541 = vmatprep.subr.mxu1 %v1085_v0 }
  0x80   :  { %483 = vmatpush2.msra.mxu0 %v1349_v40  ;;  %543 = vmatpush1.msra.mxu1 %v1248_v62 }
  0x81   :  { %484 = vmatprep.subr.mxu0 %v1085_v0  ;;  %544 = vmatprep.subr.mxu1 %v1085_v0 }
  0x82   :  { %487 = vmatpush2.msra.mxu0 %v1360_v29  ;;  %546 = vmatpush1.msra.mxu1 %v1266_v19 }
  0x83   :  { %488 = vmatprep.subr.mxu0 %v1085_v0  ;;  %547 = vmatprep.subr.mxu1 %v1085_v0 }
  0x84   :  { %491 = vmatpush2.msra.mxu0 %v1373_v2  ;;  %494 = vmatprep.mubr.f32.mxu0 %v1320_v26 }
  0x85   :  { %549 = vmatpush1.msra.mxu1 %v1274_v32  ;;  %497 = vmatmul.mubr.f32.vlgmr.msra.gmra.mxu0 %v1329_v3  ;;  %v1086_v3 = vmov 16  }
  0x86   :  { %574 = vmatprep.subr.mxu1 %v1085_v0  ;;  %598 = vmatprep.subr.mxu0 %v1085_v0 }
  0x87   :  { %576 = vmatpush2.msra.mxu1 %v1305_v58  ;;  %602 = vmatpush1.msra.mxu0 %v219_v22  ;;  %v1654_v22 = vand.u32 4294901760, %v1183_v30 }
  0x88   :  { %577 = vmatprep.subr.mxu1 %v1085_v0  ;;  %603 = vmatprep.subr.mxu0 %v1085_v0 }
  0x89   :  { %579 = vmatpush2.msra.mxu1 %v1317_v14  ;;  %607 = vmatpush1.msra.mxu0 %v226_v23  ;;  %v1664_v23 = vand.u32 4294901760, %v1313_v13 }
  0x8a   :  { %580 = vmatprep.subr.mxu1 %v1085_v0  ;;  %608 = vmatprep.subr.mxu0 %v1085_v0 }
  0x8b   :  { %582 = vmatpush2.msra.mxu1 %v1333_v33  ;;  %612 = vmatpush1.msra.mxu0 %v233_v24  ;;  %v1665_v24 = vand.u32 4294901760, %v1336_v43 }
  0x8c   :  { %583 = vmatprep.subr.mxu1 %v1085_v0  ;;  %613 = vmatprep.subr.mxu0 %v1085_v0 }
  0x8d   :  { %585 = vmatpush2.msra.mxu1 %v1345_v54  ;;  %589 = vmatprep.mubr.f32.mxu1 %v202_v48 }
  0x8e   :  { %617 = vmatpush1.msra.mxu0 %v1651_v15  ;;  %593 = vmatmul.mubr.f32.vlgmr.msra.gmra.mxu1 %v1652_v16  ;;  %v853_v15 = vld [vmem:[%s1634_s5 + $0x3] sm:$0x1]  ;;  %v948_v16 = vld [vmem:[%s1634_s5 + $0x4] ss:$0 sm:$0xff] }
  0x8f   :  { %618 = vmatprep.subr.mxu0 %v1085_v0  ;;  %730 = vmatprep.subr.mxu1 %v1085_v0 }
  0x90   :  { %622 = vmatpush1.msra.mxu0 %v1653_v18  ;;  %732 = vmatpush1.msra.mxu1 %v1140_v4  ;;  %v1656_v4 = vand.u32 4294901760, %v1212_v45  ;;  %v891_v18 = vsub.s32 0, %v890_v57 }
  0x91   :  { %623 = vmatprep.subr.mxu0 %v1085_v0  ;;  %733 = vmatprep.subr.mxu1 %v1085_v0 }
  0x92   :  { %627 = vmatpush1.msra.mxu0 %v1654_v22  ;;  %735 = vmatpush1.msra.mxu1 %v1142_v5  ;;  %v1657_v5 = vand.u32 4294901760, %v1220_v49 }
  0x93   :  { %628 = vmatprep.subr.mxu0 %v1085_v0  ;;  %736 = vmatprep.subr.mxu1 %v1085_v0 }
  0x94   :  { %632 = vmatpush1.msra.mxu0 %v1655_v20  ;;  %738 = vmatpush1.msra.mxu1 %v1144_v6  ;;  %v1658_v6 = vand.u32 4294901760, %v1232_v56  ;;  %v895_v20 = vmul.f32 0.5, %v853_v15 }
  0x95   :  { %633 = vmatprep.subr.mxu0 %v1085_v0  ;;  %739 = vmatprep.subr.mxu1 %v1085_v0 }
  0x96   :  { %637 = vmatpush1.msra.mxu0 %v1656_v4  ;;  %741 = vmatpush1.msra.mxu1 %v1146_v10  ;;  %v1659_v10 = vand.u32 4294901760, %v1244_v61  ;;  %v892_v4 = vrot.slane %v853_v15, %v891_v18 }
  0x97   :  { %638 = vmatprep.subr.mxu0 %v1085_v0  ;;  %742 = vmatprep.subr.mxu1 %v1085_v0 }
  0x98   :  { %642 = vmatpush1.msra.mxu0 %v1657_v5  ;;  %744 = vmatpush1.msra.mxu1 %v1148_v11  ;;  %v1660_v11 = vand.u32 4294901760, %v1256_v8 }
  0x99   :  { %643 = vmatprep.subr.mxu0 %v1085_v0  ;;  %745 = vmatprep.subr.mxu1 %v1085_v0 }
  0x9a   :  { %647 = vmatpush1.msra.mxu0 %v1658_v6  ;;  %747 = vmatpush1.msra.mxu1 %v1150_v12  ;;  %v1661_v12 = vand.u32 4294901760, %v1270_v31 }
  0x9b   :  { %648 = vmatprep.subr.mxu0 %v1085_v0  ;;  %748 = vmatprep.subr.mxu1 %v1085_v0 }
  0x9c   :  { %652 = vmatpush1.msra.mxu0 %v1659_v10  ;;  %750 = vmatpush1.msra.mxu1 %v1159_v17  ;;  %v1662_v17 = vand.u32 4294901760, %v1286_v41  ;;  %v899_v10 = vrot.slane %v895_v20, %v891_v18 }
  0x9d   :  { %653 = vmatprep.subr.mxu0 %v1085_v0  ;;  %751 = vmatprep.subr.mxu1 %v1085_v0 }
  0x9e   :  { %657 = vmatpush1.msra.mxu0 %v1660_v11  ;;  %753 = vmatpush1.msra.mxu1 %v1175_v25 }
  0x9f   :  { %658 = vmatprep.subr.mxu0 %v1085_v0  ;;  %754 = vmatprep.subr.mxu1 %v1085_v0 }
  0xa0   :  { %662 = vmatpush1.msra.mxu0 %v1661_v12  ;;  %756 = vmatpush1.msra.mxu1 %v1179_v28 }
  0xa1   :  { %663 = vmatprep.subr.mxu0 %v1085_v0  ;;  %757 = vmatprep.subr.mxu1 %v1085_v0 }
  0xa2   :  { %667 = vmatpush1.msra.mxu0 %v1662_v17  ;;  %759 = vmatpush1.msra.mxu1 %v1199_v38 }
  0xa3   :  { %668 = vmatprep.subr.mxu0 %v1085_v0  ;;  %760 = vmatprep.subr.mxu1 %v1085_v0 }
  0xa4   :  { %672 = vmatpush1.msra.mxu0 %v1663_v21  ;;  %762 = vmatpush1.msra.mxu1 %v1209_v44 }
  0xa5   :  { %673 = vmatprep.subr.mxu0 %v1085_v0  ;;  %763 = vmatprep.subr.mxu1 %v1085_v0 }
  0xa6   :  { %677 = vmatpush1.msra.mxu0 %v1664_v23  ;;  %765 = vmatpush1.msra.mxu1 %v1224_v50 }
  0xa7   :  { %702 = vmatprep.subr.mxu0 %v1085_v0  ;;  %766 = vmatprep.subr.mxu1 %v1085_v0 }
  0xa8   :  { %706 = vmatpush2.msra.mxu0 %v1665_v24  ;;  %768 = vmatpush1.msra.mxu1 %v1241_v60 }
  0xa9   :  { %707 = vmatprep.subr.mxu0 %v1085_v0  ;;  %769 = vmatprep.subr.mxu1 %v1085_v0 }
  0xaa   :  { %711 = vmatpush2.msra.mxu0 %v362_v7  ;;  %771 = vmatpush1.msra.mxu1 %v1248_v62  ;;  %v945_v7 = vld [vmem:[%s1634_s5] ss:$0 sm:$0xff] }
  0xab   :  { %712 = vmatprep.subr.mxu0 %v1085_v0  ;;  %772 = vmatprep.subr.mxu1 %v1085_v0 }
  0xac   :  { %716 = vmatpush2.msra.mxu0 %v369_v27  ;;  %774 = vmatpush1.msra.mxu1 %v1266_v19  ;;  %v943_v27 = vld [vmem:[%s1633_s4] ss:$0 sm:$0xff]  ;;  %s1087_s4 = smov 32   ;;  %v84_v19 = vld [vmem:[#allocation3] sm:$0xff] }
  0xad   :  { %717 = vmatprep.subr.mxu0 %v1085_v0  ;;  %775 = vmatprep.subr.mxu1 %v1085_v0 }
  0xae   :  { %721 = vmatpush2.msra.mxu0 %v376_v63  ;;  %723 = vmatprep.mubr.f32.mxu0 %v1290_v46 }
  0xaf   :  { %777 = vmatpush1.msra.mxu1 %v1274_v32  ;;  %725 = vmatmul.mubr.f32.vlgmr.msra.gmra.mxu0 %v1301_v55 }
  0xb0   :  { %802 = vmatprep.subr.mxu1 %v1085_v0  ;;  %815 = vmatprep.mubr.f32.mxu1 %v1290_v46 }
  0xb1   :  { %804 = vmatpush2.msra.mxu1 %v1305_v58  ;;  %961 = vset.pattern.permute.xlu1 %v1086_v3 }
  0xb2   :  { %805 = vmatprep.subr.mxu1 %v1085_v0  ;;  %962 = vset.pattern.permute.xlu0 %v1086_v3 }
  0xb3   :  { %807 = vmatpush2.msra.mxu1 %v1317_v14 }
  0xb4   :  { %808 = vmatprep.subr.mxu1 %v1085_v0 }
  0xb5   :  { %810 = vmatpush2.msra.mxu1 %v1333_v33 }
  0xb6   :  { %811 = vmatprep.subr.mxu1 %v1085_v0 }
  0xb7   :  { %813 = vmatpush2.msra.mxu1 %v1345_v54 }
  0xb8   :  { %817 = vmatmul.mubr.f32.vlgmr.msra.gmra.mxu1 %v1301_v55 }
 0x11c   :  { %v212_v25 = vpop.f32.mrf.mxu0 }
 0x11d   :  { %v213_v29 = vadd.f32 %v943_v27, %v212_v25 }
 0x11e   :  { %v214_v28 = vpop.f32.mrf.mxu0 }
 0x124   :  { %v384_v30 = vpop.f32.mrf.mxu1 }
 0x125   :  { %v385_v35 = vadd.f32 %v384_v30, %v213_v29 }
 0x126   :  { %v386_v38 = vpop.f32.mrf.mxu1 }
 0x145   :  { %v498_v42 = vpop.f32.mrf.mxu0 }
 0x146   :  { %v499_v50 = vadd.f32 %v498_v42, %v385_v35 }
 0x147   :  { %v500_v44 = vpop.f32.mrf.mxu0 }
 0x14e   :  { %v594_v45 = vpop.f32.mrf.mxu1 }
 0x14f   :  { %v595_v54 = vadd.f32 %v594_v45, %v499_v50 }
 0x150   :  { %v596_v48 = vpop.f32.mrf.mxu1 }
 0x16f   :  { %v726_v49 = vpop.f32.mrf.mxu0 }
 0x170   :  { %v727_v56 = vadd.f32 %v726_v49, %v595_v54 }
 0x171   :  { %v728_v0 = vpop.f32.mrf.mxu0 }
 0x178   :  { %v818_v60 = vpop.f32.mrf.mxu1 }
 0x179   :  { %v819_v61 = vadd.f32 %v818_v60, %v727_v56 }
 0x17a   :  { %v820_v62 = vpop.f32.mrf.mxu1 }
 0x17b   :  { %963 = vtanh.f32 %v819_v61  ;;  %v944_v26 = vmul.f32 -1.442695, %v819_v61 }
 0x17d   :  { %965 = vpow2.f32 %v944_v26 }
 0x188   :  { %v964_v8 = vpop.eup %963 }
 0x189   :  { %835 = vrot.lane.b32.xlu0 %v964_v8, %s1087_s4 }
 0x18a   :  { %v966_v31 = vpop.eup %965 }
 0x18b   :  { %v825_v32 = vadd.f32 1.0, %v966_v31 }
 0x18d   :  { %830 = vrot.lane.b32.xlu0 %v84_v19, %s1087_s4  ;;  %967 = vrcp.f32 %v825_v32 }
 0x19a   :  { %v968_v41 = vpop.eup %967 }
 0x1fb   :  { %v836_v46 = vpop.permute.xlu0 %835 }
 0x1fc   :  { %v838_v53 = vmul.f32 %v968_v41, %v836_v46 }
 0x1fe   :  { %840 = vrot.lane.b32.xlu1 %v838_v53, %s1087_s4 }
 0x1ff   :  { %v831_v55 = vpop.permute.xlu0 %830 }
 0x200   :  { %v833_v58 = vmul.f32 %v968_v41, %v831_v55 }
 0x202   :  { %857 = vperm.xlu1 %961, %v1278_v34   ;;  %v946_v34 = vld [vmem:[%s1634_s5 + $0x2] ss:$0 sm:$0xff]  ;;  %s1089_s5 = smov 64  }
 0x270   :  { %v841_v63 = vpop.permute.xlu1 %840 }
 0x271   :  { %v843_v13 = vadd.f32 %v841_v63, %v833_v58 }
 0x273   :  { %969 = vtanh.f32 %v843_v13  ;;  %903 = vrot.lane.b32.xlu1 %v843_v13, %s1088_s17 }
 0x27d   :  { %v858_v33 = vpop.permute.xlu1 %857 }
 0x27e   :  { %v864_v43 = vsub.f32 %v858_v33, %v945_v7 }
 0x280   :  { %v970_v14 = vpop.eup %969  ;;  %v869_v40 = vmul.f32 %v946_v34, %v864_v43 }
 0x281   :  { %846 = vrot.lane.b32.xlu0 %v970_v14, %s1087_s4 }
 0x282   :  { %v871_v2 = vceil.f32 %v869_v40  ;;  %v872_v39 = vfloor.f32 %v869_v40  ;;  %vm870_vm1 = vcmp.lt.f32.partialorder %v869_v40, 0.0 }
 0x284   :  { %v873_v1 = vsel %vm870_vm1, %v871_v2, %v872_v39 }
 0x285   :  { %v878_v52 = vmul.f32 %v947_v59, %v873_v1 }
 0x287   :  { %v879_v36 = vsub.f32 %v864_v43, %v878_v52 }
 0x289   :  { %v880_v51 = vmul.f32 %v946_v34, %v879_v36 }
 0x28b   :  { %v881_v47 = vmul.f32 2.0, %v880_v51  ;;  %v888_v6 = vmul.f32 0.001, %v880_v51  ;;  %vm893_vm2 = vcmp.lt.f32.partialorder %v880_v51, %v892_v4  ;;  %vm900_vm3 = vcmp.lt.f32.partialorder %v880_v51, %v899_v10 }
 0x28d   :  { %v886_v22 = vmul.f32 %v948_v16, %v881_v47 }
 0x28f   :  { %v887_v5 = vsub.f32 2.0, %v886_v22 }
 0x291   :  { %v894_v11 = vsel %vm893_vm2, %v887_v5, %v888_v6 }
 0x292   :  { %v901_v12 = vsel %vm900_vm3, %v886_v22, %v894_v11 }
 0x293   :  { %v907_v17 = vsub.f32 1.0, %v901_v12 }
 0x295   :  { %v908_v21 = vmul.f32 %v907_v17, %v84_v19  ;;  %v915_v30 = vmul.f32 %v907_v17, %v1258_v9 }
 0x2e5   :  { %v904_v23 = vpop.permute.xlu1 %903 }
 0x2e6   :  { %v906_v24 = vmul.f32 %v904_v23, %v901_v12 }
 0x2e8   :  { %v909_v25 = vadd.f32 %v908_v21, %v906_v24 }
 0x2ea   :  { %918 = vst.msk [vmem:[#allocation3] sm:$0xff] %vm78_vm0, %v909_v25  ;;  %921 = vrot.lane.b32.xlu1 %v909_v25, %s1087_s4 }
 0x2f3   :  { %v847_v27 = vpop.permute.xlu0 %846 }
 0x2f4   :  { %v849_v28 = vmul.f32 %v968_v41, %v847_v27 }
 0x2f6   :  { %911 = vrot.lane.b32.xlu0 %v849_v28, %s1089_s5 }
 0x35c   :  { %v922_v42 = vpop.permute.xlu1 %921 }
 0x368   :  { %v912_v29 = vpop.permute.xlu0 %911 }
 0x369   :  { %v914_v35 = vmul.f32 %v912_v29, %v901_v12 }
 0x36b   :  { %v916_v38 = vadd.f32 %v915_v30, %v914_v35 }
 0x36d   :  { %917 = vst.msk [vmem:[#allocation2] sm:$0xff] %vm78_vm0, %v916_v38  ;;  %919 = vst.msk [vmem:[#allocation12] sm:$0xff] %vm78_vm0, %v916_v38 }
 0x36e   :  { %925 = vst.msk [vmem:[#allocation12] sm:$0xff] %vm924_vm4, %v922_v42 }
 0x36f   :  { %1062 = shalt.err (!%p1059_p10)
}
 0x370   :  { %935 = dma.vmem_to_hbm [thread:$0]  %s933_s29, 128, %s1635_s6, [#allocation6]  }
 0x371   :  { %1077 = dma.done.wait [#allocation6], 128  }
 0x372   :  { %1078 = vsyncadd [#allocation6], 4294967168 }
 0x373   :  { %939 = vsyncpa [#allocation5], 1 }
 0x374   :  { %940 = vsyncpa [#allocation8], 1 }
 0x375   :  { %941 = vsyncpa [#allocation11], 1 }
 0x376   :  { %942 = vsyncpa [#allocation6], 1 }

</bundles_post_ra>
